<compile_context>
chip_gen: v5e
topology: v5e:2x2
jax: 0.10.0
libtpu: 0.0.40
codegen_flags: <defaults>
</compile_context>

<pallas_src>
import jax
import jax.numpy as jnp
from jax.experimental import pallas as pl
from jax.experimental.pallas import tpu as pltpu


def _round_up(a, b):
    return (a + b - 1) // b * b


def _cdiv(a, b):
    return -(-a // b)


# ----------------------------------------------------------------------------
# Kernels
# ----------------------------------------------------------------------------
def _residual2_kernel_resident(x_ref, x2_ref, w1_ref, w2_ref, b_ref, o_ref):
    """Weights fully VMEM-resident; one (tm, Dp) row tile per grid step.

    out = tanh(x @ W1 + x2 @ W2 + b) + x
    """
    mxu_dtype = w1_ref.dtype
    h = jnp.dot(x_ref[...].astype(mxu_dtype), w1_ref[...],
                preferred_element_type=jnp.float32)
    h += jnp.dot(x2_ref[...], w2_ref[...], preferred_element_type=jnp.float32)
    h += b_ref[...]                                   # (1, Dp) broadcast (VPU)
    o_ref[...] = (jnp.tanh(h) + x_ref[...].astype(jnp.float32)).astype(o_ref.dtype)


def _residual2_kernel_ksplit(xk_ref, x2k_ref, w1_ref, w2_ref, b_ref, xres_ref,
                             o_ref, acc_ref):
    """K-split path: grid = (grid_m, grid_k), f32 accumulator in VMEM."""
    k = pl.program_id(1)

    @pl.when(k == 0)
    def _init():
        acc_ref[...] = jnp.zeros_like(acc_ref)

    acc_ref[...] += jnp.dot(xk_ref[...], w1_ref[...],
                            preferred_element_type=jnp.float32)
    acc_ref[...] += jnp.dot(x2k_ref[...], w2_ref[...],
                            preferred_element_type=jnp.float32)

    @pl.when(k == pl.num_programs(1) - 1)
    def _finalize():
        h = acc_ref[...] + b_ref[...]
        o_ref[...] = (jnp.tanh(h)
                      + xres_ref[...].astype(jnp.float32)).astype(o_ref.dtype)


# ----------------------------------------------------------------------------
# Tiling / VMEM heuristics
# ----------------------------------------------------------------------------
def _choose_tm(M, tm_max):
    """Balanced row tile: multiple of 8, >= 2 tiles for large M (v7x has 2 TCs),
    bumped to a multiple of 256 only when that adds little padding."""
    if M <= 256:
        return _round_up(max(M, 8), 8)
    min_tiles = 2 if M >= 512 else 1
    n_tiles = max(min_tiles, _cdiv(M, tm_max))
    tm = _round_up(_cdiv(M, n_tiles), 8)
    if tm % 256:
        tm256 = _round_up(tm, 256)
        if tm256 <= tm_max and n_tiles * tm256 - M <= max(128, M // 16):
            tm = tm256
    return min(tm, _round_up(M, 8))


def _vmem_bytes(tm, tk, Dp, grid_k, x_bytes, mxu_bytes, out_bytes):
    """Exact per-call VMEM buffer accounting for the two kernel structures."""
    if grid_k == 1:
        return (2 * tm * Dp * x_bytes          # x tile (double-buffered)
                + 2 * tm * Dp * mxu_bytes      # x2 tile
                + 2 * tm * Dp * out_bytes      # out tile
                + 2 * tk * Dp * mxu_bytes      # W1 + W2 (single-buffered, resident)
                + Dp * 4)                      # bias (single-buffered)
    return (2 * 2 * tm * tk * mxu_bytes        # xk, x2k contraction tiles
            + 2 * 2 * tk * Dp * mxu_bytes      # W1, W2 blocks (double-buffered)
            + 2 * tm * Dp * x_bytes            # x residual tile
            + 2 * tm * Dp * out_bytes          # out tile
            + tm * Dp * 4                      # f32 accumulator scratch
            + Dp * 4)                          # bias


def _choose_grid_k(Dp, tm, cap, x_bytes, mxu_bytes, out_bytes, min_grid_k):
    n_lane = Dp // 128
    for g in range(1, n_lane + 1):
        if n_lane % g or g < min_grid_k:
            continue
        tk = Dp // g
        if int(1.5 * _vmem_bytes(tm, tk, Dp, g, x_bytes, mxu_bytes, out_bytes)) <= cap:
            return g, tk
    return n_lane, 128


# ----------------------------------------------------------------------------
# Wrapper
# ----------------------------------------------------------------------------
def residual2(x, x2, w1, w2, b, *, mxu_dtype=jnp.bfloat16, out_dtype=None,
              tm_max=1024, min_grid_k=1):
    """out = tanh(x @ w1 + x2 @ w2 + b) + x, fused into one Pallas kernel.

    x, x2: (B, N, D); w1, w2: (D, D); b: (D,).
    `min_grid_k` > 1 forces the K-split accumulator path (testing / huge D).
    """
    assert x.shape == x2.shape
    B, N, D = x.shape
    assert w1.shape == (D, D) and w2.shape == (D, D) and b.shape == (D,)
    M = B * N
    out_dtype = x.dtype if out_dtype is None else out_dtype

    x_bytes = jnp.dtype(x.dtype).itemsize
    mxu_bytes = jnp.dtype(mxu_dtype).itemsize
    out_bytes = jnp.dtype(out_dtype).itemsize

    Dp = _round_up(D, 128)                    # lane-dense last dim (unmasked vst)

    # --- generation-aware VMEM cap (64 MiB on v7x, 128 MiB on v5e/v6e) ------
    try:
        vmem_cap = int(pltpu.get_tpu_info().vmem_capacity_bytes)
    except Exception:
        vmem_cap = 64 << 20                   # conservative (v7x) fallback
    cap = int(vmem_cap * 0.85)

    # --- row tile + contraction tile -----------------------------------------
    tm = _choose_tm(M, tm_max)
    while True:
        grid_k, tk = _choose_grid_k(Dp, tm, cap, x_bytes, mxu_bytes, out_bytes,
                                    min_grid_k)
        need = _vmem_bytes(tm, tk, Dp, grid_k, x_bytes, mxu_bytes, out_bytes)
        if int(1.5 * need) <= cap or tm <= 8:
            break
        tm = max(8, _round_up(tm // 2, 8))    # shrink rows if even tk=128 is too big

    Mp = _round_up(M, tm)
    grid_m = Mp // tm
    vmem_limit = int(min(cap, max(int(1.5 * need), 16 << 20)))

    # --- wrapper-side layout: pad ONLY when actually needed ------------------
    pad_m, pad_d = Mp - M, Dp - D
    xf = x.reshape(M, D)                       # contiguity-preserving reshape
    x2f = x2.reshape(M, D).astype(mxu_dtype)   # MXU-only operand already in bf16
    w1p = w1.astype(mxu_dtype)
    w2p = w2.astype(mxu_dtype)
    bp = b.astype(jnp.float32).reshape(1, D)
    if pad_m or pad_d:
        xf = jnp.pad(xf, ((0, pad_m), (0, pad_d)))
        x2f = jnp.pad(x2f, ((0, pad_m), (0, pad_d)))
    if pad_d:
        w1p = jnp.pad(w1p, ((0, pad_d), (0, pad_d)))
        w2p = jnp.pad(w2p, ((0, pad_d), (0, pad_d)))
        bp = jnp.pad(bp, ((0, 0), (0, pad_d)))

    cost = pl.CostEstimate(
        flops=2 * 2 * Mp * Dp * Dp,                    # two (Mp,Dp)x(Dp,Dp) matmuls
        transcendentals=Mp * Dp,                       # tanh
        bytes_accessed=(Mp * Dp * x_bytes              # x in
                        + Mp * Dp * mxu_bytes          # x2 in (bf16)
                        + Mp * Dp * out_bytes          # out
                        + 2 * Dp * Dp * mxu_bytes      # W1, W2
                        + Dp * 4),                     # bias
    )
    params = pltpu.CompilerParams(
        dimension_semantics=("parallel",) if grid_k == 1 else ("parallel", "arbitrary"),
        vmem_limit_bytes=vmem_limit,
    )

    def _run(single_buffer_consts):
        def _const(shape, index_map):
            if single_buffer_consts:
                return pl.BlockSpec(shape, index_map, pipeline_mode=pl.Buffered(1))
            return pl.BlockSpec(shape, index_map)

        if grid_k == 1:
            return pl.pallas_call(
                _residual2_kernel_resident,
                out_shape=jax.ShapeDtypeStruct((Mp, Dp), out_dtype),
                grid=(grid_m,),
                in_specs=[
                    pl.BlockSpec((tm, Dp), lambda i: (i, 0)),     # x (f32: MXU + residual)
                    pl.BlockSpec((tm, Dp), lambda i: (i, 0)),     # x2 (bf16)
                    _const((Dp, Dp), lambda i: (0, 0)),           # W1 (resident)
                    _const((Dp, Dp), lambda i: (0, 0)),           # W2 (resident)
                    _const((1, Dp), lambda i: (0, 0)),            # bias (resident)
                ],
                out_specs=pl.BlockSpec((tm, Dp), lambda i: (i, 0)),
                compiler_params=params,
                cost_estimate=cost,
            )(xf, x2f, w1p, w2p, bp)

        # K-split path: extra bf16 copy of x for the contraction blocks; the f32
        # copy stays for the residual (only used in the huge-D regime where
        # weight DMA dominates).
        xk = xf.astype(mxu_dtype)
        return pl.pallas_call(
            _residual2_kernel_ksplit,
            out_shape=jax.ShapeDtypeStruct((Mp, Dp), out_dtype),
            grid=(grid_m, grid_k),
            in_specs=[
                pl.BlockSpec((tm, tk), lambda i, k: (i, k)),      # x (bf16, contraction)
                pl.BlockSpec((tm, tk), lambda i, k: (i, k)),      # x2 (bf16, contraction)
                pl.BlockSpec((tk, Dp), lambda i, k: (k, 0)),      # W1 block
                pl.BlockSpec((tk, Dp), lambda i, k: (k, 0)),      # W2 block
                _const((1, Dp), lambda i, k: (0, 0)),             # bias (resident)
                pl.BlockSpec((tm, Dp), lambda i, k: (i, 0)),      # x residual (f32)
            ],
            out_specs=pl.BlockSpec((tm, Dp), lambda i, k: (i, 0)),
            scratch_shapes=[pltpu.VMEM((tm, Dp), jnp.float32)],
            compiler_params=params,
            cost_estimate=cost,
        )(xk, x2f, w1p, w2p, bp, xf)

    try:
        out = _run(True)
    except Exception:
        # Fallback for Pallas versions that reject single-buffered constants.
        out = _run(False)

    if pad_m or pad_d:
        out = out[:M, :D]
    return out.reshape(B, N, D)


# ----------------------------------------------------------------------------
# Demo / self-test
# ----------------------------------------------------------------------------
if __name__ == "__main__":
    # ---- small shapes consistent with the module (f32 MXU, tight tolerance) --
    B, N, D = 2, 8, 32
    kx, kx2, kw1, kw2, kb = jax.random.split(jax.random.PRNGKey(0), 5)
    x = jax.random.normal(kx, (B, N, D), dtype=jnp.float32)
    x2 = jax.random.normal(kx2, (B, N, D), dtype=jnp.float32)
    w1 = jax.random.normal(kw1, (D, D), dtype=jnp.float32) * (1.0 / (D ** 0.5))
    w2 = jax.random.normal(kw2, (D, D), dtype=jnp.float32) * (1.0 / (D ** 0.5))
    b = jax.random.normal(kb, (D,), dtype=jnp.float32) * 0.02

    out = residual2(x, x2, w1, w2, b, mxu_dtype=jnp.float32)
    jax.block_until_ready(out)
    ref = jnp.tanh(x @ w1 + x2 @ w2 + b) + x
    assert out.shape == (B, N, D)
    assert jnp.allclose(out, ref, atol=1e-5, rtol=1e-5)

    # ---- larger aligned run: no padding, 2 row tiles, default bf16 MXU ------
    B2, N2, D2 = 4, 256, 256
    kx, kx2, kw1, kw2, kb = jax.random.split(jax.random.PRNGKey(1), 5)
    xL = jax.random.normal(kx, (B2, N2, D2), dtype=jnp.float32)
    x2L = jax.random.normal(kx2, (B2, N2, D2), dtype=jnp.float32)
    w1L = jax.random.normal(kw1, (D2, D2), dtype=jnp.float32) * (1.0 / (D2 ** 0.5))
    w2L = jax.random.normal(kw2, (D2, D2), dtype=jnp.float32) * (1.0 / (D2 ** 0.5))
    bL = jax.random.normal(kb, (D2,), dtype=jnp.float32) * 0.02
    refL = jnp.tanh(xL @ w1L + x2L @ w2L + bL) + xL

    outL = residual2(xL, x2L, w1L, w2L, bL)            # bf16 MXU default
    jax.block_until_ready(outL)
    assert outL.shape == (B2, N2, D2)
    assert jnp.allclose(outL, refL, atol=5e-2, rtol=5e-2)

    # ---- exercise the K-split accumulator path (forced grid_k = 2) ----------
    outK = residual2(xL, x2L, w1L, w2L, bL, min_grid_k=2)
    jax.block_until_ready(outK)
    assert jnp.allclose(outK, refL, atol=5e-2, rtol=5e-2)

    print("KERNEL_OK")
</pallas_src>

<mosaic_0001>
module attributes {stable_mosaic.version = 11 : i64} {
  func.func @_residual2_kernel_resident(%arg0: i32, %arg1: memref<16x128xf32, #tpu.memory_space<vmem>>, %arg2: memref<16x128xf32, #tpu.memory_space<vmem>>, %arg3: memref<128x128xf32, #tpu.memory_space<vmem>>, %arg4: memref<128x128xf32, #tpu.memory_space<vmem>>, %arg5: memref<1x128xf32, #tpu.memory_space<vmem>>, %arg6: memref<16x128xf32, #tpu.memory_space<vmem>>) attributes {dimension_semantics = [#tpu.dimension_semantics<parallel>], iteration_bounds = array<i64: 1>, scalar_prefetch = 0 : i64, scratch_operands = 0 : i64, tpu.core_type = #tpu.core_type<tc>, window_params = [{transform_indices = @transform_0, window_bounds = array<i64: 16, 128>}, {transform_indices = @transform_1, window_bounds = array<i64: 16, 128>}, {pipeline_mode = #tpu.pipeline_mode<synchronous>, transform_indices = @transform_2, window_bounds = array<i64: 128, 128>}, {pipeline_mode = #tpu.pipeline_mode<synchronous>, transform_indices = @transform_3, window_bounds = array<i64: 128, 128>}, {pipeline_mode = #tpu.pipeline_mode<synchronous>, transform_indices = @transform_4, window_bounds = array<i64: 1, 128>}, {transform_indices = @transform_5, window_bounds = array<i64: 16, 128>}]} {
    %c0 = arith.constant 0 : index
    %c0_0 = arith.constant 0 : index
    %0 = vector.load %arg1[%c0, %c0_0] : memref<16x128xf32, #tpu.memory_space<vmem>>, vector<16x128xf32>
    %c0_1 = arith.constant 0 : index
    %c0_2 = arith.constant 0 : index
    %1 = vector.load %arg3[%c0_1, %c0_2] : memref<128x128xf32, #tpu.memory_space<vmem>>, vector<128x128xf32>
    %cst = arith.constant dense<0.000000e+00> : vector<16x128xf32>
    %2 = tpu.matmul %0, %1, %cst {dimension_numbers = #tpu.dot_dimension_numbers<[1], [0], [0], [1], [0, 0, 1, 1], [], []>} : vector<16x128xf32>, vector<128x128xf32>, vector<16x128xf32> -> vector<16x128xf32>
    %c0_3 = arith.constant 0 : index
    %c0_4 = arith.constant 0 : index
    %3 = vector.load %arg2[%c0_3, %c0_4] : memref<16x128xf32, #tpu.memory_space<vmem>>, vector<16x128xf32>
    %c0_5 = arith.constant 0 : index
    %c0_6 = arith.constant 0 : index
    %4 = vector.load %arg4[%c0_5, %c0_6] : memref<128x128xf32, #tpu.memory_space<vmem>>, vector<128x128xf32>
    %cst_7 = arith.constant dense<0.000000e+00> : vector<16x128xf32>
    %5 = tpu.matmul %3, %4, %cst_7 {dimension_numbers = #tpu.dot_dimension_numbers<[1], [0], [0], [1], [0, 0, 1, 1], [], []>} : vector<16x128xf32>, vector<128x128xf32>, vector<16x128xf32> -> vector<16x128xf32>
    %6 = arith.addf %2, %5 : vector<16x128xf32>
    %c0_8 = arith.constant 0 : index
    %c0_9 = arith.constant 0 : index
    %7 = vector.load %arg5[%c0_8, %c0_9] : memref<1x128xf32, #tpu.memory_space<vmem>>, vector<1x128xf32>
    %8 = vector.broadcast %7 : vector<1x128xf32> to vector<16x128xf32>
    %9 = arith.addf %6, %8 : vector<16x128xf32>
    %10 = math.tanh %9 : vector<16x128xf32>
    %c0_10 = arith.constant 0 : index
    %c0_11 = arith.constant 0 : index
    %11 = vector.load %arg1[%c0_10, %c0_11] : memref<16x128xf32, #tpu.memory_space<vmem>>, vector<16x128xf32>
    %12 = arith.addf %10, %11 : vector<16x128xf32>
    %c0_12 = arith.constant 0 : index
    %c0_13 = arith.constant 0 : index
    %13 = vector.load %arg6[%c0_12, %c0_13] : memref<16x128xf32, #tpu.memory_space<vmem>>, vector<16x128xf32>
    tpu.vector_store %arg6[%c0_12, %c0_13], %12 {strides = array<i32>} : memref<16x128xf32, #tpu.memory_space<vmem>>, vector<16x128xf32>,
    return
  }
  func.func @transform_0(%arg0: i32) -> (i32, i32) {
    %c0_i32 = arith.constant 0 : i32
    %c0_i32_0 = arith.constant 0 : i32
    return %arg0, %c0_i32 : i32, i32
  }
  func.func @transform_1(%arg0: i32) -> (i32, i32) {
    %c0_i32 = arith.constant 0 : i32
    %c0_i32_0 = arith.constant 0 : i32
    return %arg0, %c0_i32 : i32, i32
  }
  func.func @transform_2(%arg0: i32) -> (i32, i32) {
    %c0_i32 = arith.constant 0 : i32
    %c0_i32_0 = arith.constant 0 : i32
    %c0_i32_1 = arith.constant 0 : i32
    return %c0_i32, %c0_i32_0 : i32, i32
  }
  func.func @transform_3(%arg0: i32) -> (i32, i32) {
    %c0_i32 = arith.constant 0 : i32
    %c0_i32_0 = arith.constant 0 : i32
    %c0_i32_1 = arith.constant 0 : i32
    return %c0_i32, %c0_i32_0 : i32, i32
  }
  func.func @transform_4(%arg0: i32) -> (i32, i32) {
    %c0_i32 = arith.constant 0 : i32
    %c0_i32_0 = arith.constant 0 : i32
    %c0_i32_1 = arith.constant 0 : i32
    return %c0_i32, %c0_i32_0 : i32, i32
  }
  func.func @transform_5(%arg0: i32) -> (i32, i32) {
    %c0_i32 = arith.constant 0 : i32
    %c0_i32_0 = arith.constant 0 : i32
    return %arg0, %c0_i32 : i32, i32
  }
}

module attributes {stable_mosaic.version = 11 : i64} {
  func.func @_residual2_kernel_resident(%arg0: i32, %arg1: memref<16x128xf32, #tpu.memory_space<vmem>>, %arg2: memref<16x128xf32, #tpu.memory_space<vmem>>, %arg3: memref<128x128xf32, #tpu.memory_space<vmem>>, %arg4: memref<128x128xf32, #tpu.memory_space<vmem>>, %arg5: memref<1x128xf32, #tpu.memory_space<vmem>>, %arg6: memref<16x128xf32, #tpu.memory_space<vmem>>) attributes {dimension_semantics = [#tpu.dimension_semantics<parallel>], iteration_bounds = array<i64: 1>, scalar_prefetch = 0 : i64, scratch_operands = 0 : i64, tpu.core_type = #tpu.core_type<tc>, window_params = [{transform_indices = @transform_0, window_bounds = array<i64: 16, 128>}, {transform_indices = @transform_1, window_bounds = array<i64: 16, 128>}, {pipeline_mode = #tpu.pipeline_mode<synchronous>, transform_indices = @transform_2, window_bounds = array<i64: 128, 128>}, {pipeline_mode = #tpu.pipeline_mode<synchronous>, transform_indices = @transform_3, window_bounds = array<i64: 128, 128>}, {pipeline_mode = #tpu.pipeline_mode<synchronous>, transform_indices = @transform_4, window_bounds = array<i64: 1, 128>}, {transform_indices = @transform_5, window_bounds = array<i64: 16, 128>}]} {
    %c0 = arith.constant 0 : index
    %c0_0 = arith.constant 0 : index
    %0 = vector.load %arg1[%c0, %c0_0] : memref<16x128xf32, #tpu.memory_space<vmem>>, vector<16x128xf32>
    %c0_1 = arith.constant 0 : index
    %c0_2 = arith.constant 0 : index
    %1 = vector.load %arg3[%c0_1, %c0_2] : memref<128x128xf32, #tpu.memory_space<vmem>>, vector<128x128xf32>
    %cst = arith.constant dense<0.000000e+00> : vector<16x128xf32>
    %2 = tpu.matmul %0, %1, %cst {dimension_numbers = #tpu.dot_dimension_numbers<[1], [0], [0], [1], [0, 0, 1, 1], [], []>} : vector<16x128xf32>, vector<128x128xf32>, vector<16x128xf32> -> vector<16x128xf32>
    %c0_3 = arith.constant 0 : index
    %c0_4 = arith.constant 0 : index
    %3 = vector.load %arg2[%c0_3, %c0_4] : memref<16x128xf32, #tpu.memory_space<vmem>>, vector<16x128xf32>
    %c0_5 = arith.constant 0 : index
    %c0_6 = arith.constant 0 : index
    %4 = vector.load %arg4[%c0_5, %c0_6] : memref<128x128xf32, #tpu.memory_space<vmem>>, vector<128x128xf32>
    %cst_7 = arith.constant dense<0.000000e+00> : vector<16x128xf32>
    %5 = tpu.matmul %3, %4, %cst_7 {dimension_numbers = #tpu.dot_dimension_numbers<[1], [0], [0], [1], [0, 0, 1, 1], [], []>} : vector<16x128xf32>, vector<128x128xf32>, vector<16x128xf32> -> vector<16x128xf32>
    %6 = arith.addf %2, %5 : vector<16x128xf32>
    %c0_8 = arith.constant 0 : index
    %c0_9 = arith.constant 0 : index
    %7 = vector.load %arg5[%c0_8, %c0_9] : memref<1x128xf32, #tpu.memory_space<vmem>>, vector<1x128xf32>
    %8 = vector.broadcast %7 : vector<1x128xf32> to vector<16x128xf32>
    %9 = arith.addf %6, %8 : vector<16x128xf32>
    %10 = math.tanh %9 : vector<16x128xf32>
    %c0_10 = arith.constant 0 : index
    %c0_11 = arith.constant 0 : index
    %11 = vector.load %arg1[%c0_10, %c0_11] : memref<16x128xf32, #tpu.memory_space<vmem>>, vector<16x128xf32>
    %12 = arith.addf %10, %11 : vector<16x128xf32>
    %c0_12 = arith.constant 0 : index
    %c0_13 = arith.constant 0 : index
    %13 = vector.load %arg6[%c0_12, %c0_13] : memref<16x128xf32, #tpu.memory_space<vmem>>, vector<16x128xf32>
    tpu.vector_store %arg6[%c0_12, %c0_13], %12 {strides = array<i32>} : memref<16x128xf32, #tpu.memory_space<vmem>>, vector<16x128xf32>,
    return
  }
  func.func @transform_0(%arg0: i32) -> (i32, i32) {
    %c0_i32 = arith.constant 0 : i32
    %c0_i32_0 = arith.constant 0 : i32
    return %arg0, %c0_i32 : i32, i32
  }
  func.func @transform_1(%arg0: i32) -> (i32, i32) {
    %c0_i32 = arith.constant 0 : i32
    %c0_i32_0 = arith.constant 0 : i32
    return %arg0, %c0_i32 : i32, i32
  }
  func.func @transform_2(%arg0: i32) -> (i32, i32) {
    %c0_i32 = arith.constant 0 : i32
    %c0_i32_0 = arith.constant 0 : i32
    %c0_i32_1 = arith.constant 0 : i32
    return %c0_i32, %c0_i32_0 : i32, i32
  }
  func.func @transform_3(%arg0: i32) -> (i32, i32) {
    %c0_i32 = arith.constant 0 : i32
    %c0_i32_0 = arith.constant 0 : i32
    %c0_i32_1 = arith.constant 0 : i32
    return %c0_i32, %c0_i32_0 : i32, i32
  }
  func.func @transform_4(%arg0: i32) -> (i32, i32) {
    %c0_i32 = arith.constant 0 : i32
    %c0_i32_0 = arith.constant 0 : i32
    %c0_i32_1 = arith.constant 0 : i32
    return %c0_i32, %c0_i32_0 : i32, i32
  }
  func.func @transform_5(%arg0: i32) -> (i32, i32) {
    %c0_i32 = arith.constant 0 : i32
    %c0_i32_0 = arith.constant 0 : i32
    return %arg0, %c0_i32 : i32, i32
  }
}

</mosaic_0001>

<bundles_post_ra>
// kernel: tpu_custom_call.1
= control target key start
LH: loop header
LB: loop body
LE: loop exit
PB: predicated region body
PF: predicated region fallthrough
CT: control target
= control target key end

     0   :  { %10 = vsyncpa [#allocation3], 0  ;;  %s441_s0 = inlined_call_operand.hbm [shape: f32[16,128], index: 0, kind: input, shape index: {}]   ;;  %s442_s1 = inlined_call_operand.hbm [shape: f32[16,128], index: 1, kind: input, shape index: {}]   ;;  %s443_s2 = inlined_call_operand.hbm [shape: f32[128,128], index: 2, kind: input, shape index: {}]   ;;  %s444_s3 = inlined_call_operand.hbm [shape: f32[128,128], index: 3, kind: input, shape index: {}]   ;;  %s445_s4 = inlined_call_operand.vmem [shape: f32[1,128], index: 4, kind: input, shape index: {}]   ;;  %s446_s5 = inlined_call_operand.hbm [shape: f32[16,128], index: 5, kind: output, shape index: {}]  }
   0x1   :  { %11 = vsyncpa [#allocation6], 0 }
   0x2   :  { %12 = vsyncpa [#allocation9], 0 }
   0x3   :  { %13 = vsyncpa [#allocation4], 0  ;;  %s31_s20 = sshll.u32 %s442_s1, 4  ;;  %s371_s21 = smov [#allocation5]   ;;  %s32_s20 = int_to_ptr.hbm [resolvable:$true] %s31_s20 }
   0x4   :  { %s33_s22 = sshll.u32 %s371_s21, 4  ;;  %s18_s25 = sshll.u32 %s441_s0, 4  ;;  %s34_s22 = int_to_ptr.vmem [resolvable:$true] %s33_s22  ;;  %s19_s25 = int_to_ptr.hbm [resolvable:$true] %s18_s25 }
   0x5   :  { %s372_s26 = smov 128   ;;  %s373_s27 = smov 8  }
   0x6   :  { %39 = dma.hbm_to_vmem [thread:$0]  %s32_s20, 256, %s34_s22, [#allocation6], %s372_s26, %s372_s26, %s373_s27  }
   0x7   :  { %s374_s28 = smov [#allocation2]   ;;  %s44_s1 = sshll.u32 %s443_s2, 4  ;;  %s45_s1 = int_to_ptr.hbm [resolvable:$true] %s44_s1 }
   0x8   :  { %s20_s29 = sshll.u32 %s374_s28, 4  ;;  %s57_s8 = sshll.u32 %s444_s3, 4  ;;  %s21_s29 = int_to_ptr.vmem [resolvable:$true] %s20_s29  ;;  %s58_s8 = int_to_ptr.hbm [resolvable:$true] %s57_s8 }
   0x9   :  { %26 = dma.hbm_to_vmem [thread:$0]  %s19_s25, 256, %s21_s29, [#allocation3], %s372_s26, %s372_s26, %s373_s27  }
   0xa   :  { %s375_s9 = smov [#allocation7]   ;;  %s376_s11 = smov [#allocation8]  }
   0xb   :  { %s46_s10 = sshll.u32 %s375_s9, 4  ;;  %s59_s2 = sshll.u32 %s376_s11, 4  ;;  %s47_s10 = int_to_ptr.vmem [resolvable:$true] %s46_s10  ;;  %s60_s2 = int_to_ptr.vmem [resolvable:$true] %s59_s2 }
   0xc   :  { %52 = dma.hbm_to_vmem [thread:$0]  %s45_s1, 2048, %s47_s10, [#allocation6], %s372_s26, %s372_s26, %s373_s27  }
   0xd   :  { %65 = dma.hbm_to_vmem [thread:$0]  %s58_s8, 2048, %s60_s2, [#allocation9], %s372_s26, %s372_s26, %s373_s27  }
   0xe   :  { %363 = dma.done.wait [#allocation3], 256  }
   0xf   :  { %364 = vsyncadd [#allocation3], 4294967040 }
  0x10   :  { %365 = dma.done.wait [#allocation6], 2304  }
  0x11   :  { %366 = vsyncadd [#allocation6], 4294964992 }
  0x12   :  { %367 = dma.done.wait [#allocation9], 2048  }
  0x13   :  { %368 = vsyncadd [#allocation9], 4294965248  ;;  %v119_v0 = vld [vmem:[#allocation8 + $0x78] sm:$0xff]  ;;  %v118_v2 = vld [vmem:[#allocation8 + $0x70] sm:$0xff]  ;;  %s377_s13 = smov [#allocation10]   ;;  %s184_s17 = sshll.u32 %s446_s5, 4  ;;  %s185_s17 = int_to_ptr.hbm [resolvable:$true] %s184_s17 }
  0x14   :  { %v101_v1 = vld [vmem:[#allocation7 + $0x78] sm:$0xff]  ;;  %199 = vmatpush.msra.mxu2 %v119_v0  ;;  %v100_v3 = vld [vmem:[#allocation7 + $0x70] sm:$0xff]  ;;  %v117_v4 = vld [vmem:[#allocation8 + $0x68] sm:$0xff]  ;;  %120 = vmatpush.msra.mxu0 %v119_v0  ;;  %s182_s14 = sshll.u32 %s377_s13, 4  ;;  %s183_s14 = int_to_ptr.vmem [resolvable:$true] %s182_s14 }
  0x15   :  { %215 = vmatpush.msra.mxu3 %v101_v1  ;;  %v99_v5 = vld [vmem:[#allocation7 + $0x68] sm:$0xff]  ;;  %143 = vmatpush.msra.mxu1 %v101_v1  ;;  %v116_v6 = vld [vmem:[#allocation8 + $0x60] sm:$0xff]  ;;  %v115_v8 = vld [vmem:[#allocation8 + $0x58] sm:$0xff] }
  0x16   :  { %200 = vmatpush.msra.mxu2 %v118_v2  ;;  %v98_v7 = vld [vmem:[#allocation7 + $0x60] sm:$0xff]  ;;  %121 = vmatpush.msra.mxu0 %v118_v2  ;;  %v97_v9 = vld [vmem:[#allocation7 + $0x58] sm:$0xff]  ;;  %v114_v10 = vld [vmem:[#allocation8 + $0x50] sm:$0xff] }
  0x17   :  { %216 = vmatpush.msra.mxu3 %v100_v3  ;;  %144 = vmatpush.msra.mxu1 %v100_v3  ;;  %v96_v11 = vld [vmem:[#allocation7 + $0x50] sm:$0xff]  ;;  %v113_v12 = vld [vmem:[#allocation8 + $0x48] sm:$0xff]  ;;  %v112_v14 = vld [vmem:[#allocation8 + $0x40] sm:$0xff] }
  0x18   :  { %201 = vmatpush.msra.mxu2 %v117_v4  ;;  %122 = vmatpush.msra.mxu0 %v117_v4  ;;  %v95_v13 = vld [vmem:[#allocation7 + $0x48] sm:$0xff]  ;;  %v94_v15 = vld [vmem:[#allocation7 + $0x40] sm:$0xff]  ;;  %v111_v16 = vld [vmem:[#allocation8 + $0x38] sm:$0xff] }
  0x19   :  { %217 = vmatpush.msra.mxu3 %v99_v5  ;;  %145 = vmatpush.msra.mxu1 %v99_v5  ;;  %v93_v17 = vld [vmem:[#allocation7 + $0x38] sm:$0xff]  ;;  %v110_v18 = vld [vmem:[#allocation8 + $0x30] sm:$0xff]  ;;  %v109_v20 = vld [vmem:[#allocation8 + $0x28] sm:$0xff] }
  0x1a   :  { %202 = vmatpush.msra.mxu2 %v116_v6  ;;  %123 = vmatpush.msra.mxu0 %v116_v6  ;;  %v92_v19 = vld [vmem:[#allocation7 + $0x30] sm:$0xff]  ;;  %v91_v21 = vld [vmem:[#allocation7 + $0x28] sm:$0xff]  ;;  %v108_v22 = vld [vmem:[#allocation8 + $0x20] sm:$0xff] }
  0x1b   :  { %218 = vmatpush.msra.mxu3 %v98_v7  ;;  %146 = vmatpush.msra.mxu1 %v98_v7  ;;  %v90_v23 = vld [vmem:[#allocation7 + $0x20] sm:$0xff]  ;;  %v107_v24 = vld [vmem:[#allocation8 + $0x18] sm:$0xff]  ;;  %v106_v26 = vld [vmem:[#allocation8 + $0x10] sm:$0xff] }
  0x1c   :  { %203 = vmatpush.msra.mxu2 %v115_v8  ;;  %124 = vmatpush.msra.mxu0 %v115_v8  ;;  %v89_v25 = vld [vmem:[#allocation7 + $0x18] sm:$0xff]  ;;  %v88_v27 = vld [vmem:[#allocation7 + $0x10] sm:$0xff]  ;;  %v105_v28 = vld [vmem:[#allocation8 + $0x8] sm:$0xff] }
  0x1d   :  { %219 = vmatpush.msra.mxu3 %v97_v9  ;;  %147 = vmatpush.msra.mxu1 %v97_v9  ;;  %v87_v29 = vld [vmem:[#allocation7 + $0x8] sm:$0xff]  ;;  %v104_v30 = vld [vmem:[#allocation8] sm:$0xff]  ;;  %v103_v32 = vld [vmem:[#allocation5 + $0x8] sm:$0xff] }
  0x1e   :  { %204 = vmatpush.msra.mxu2 %v114_v10  ;;  %125 = vmatpush.msra.mxu0 %v114_v10  ;;  %v86_v31 = vld [vmem:[#allocation7] sm:$0xff]  ;;  %v85_v33 = vld [vmem:[#allocation2 + $0x8] sm:$0xff]  ;;  %v102_v34 = vld [vmem:[#allocation5] sm:$0xff] }
  0x1f   :  { %220 = vmatpush.msra.mxu3 %v96_v11  ;;  %148 = vmatpush.msra.mxu1 %v96_v11  ;;  %v84_v35 = vld [vmem:[#allocation2] sm:$0xff] }
  0x20   :  { %205 = vmatpush.msra.mxu2 %v113_v12  ;;  %126 = vmatpush.msra.mxu0 %v113_v12  ;;  %v238_v36 = vld [vmem:[%s445_s4] ss:$0 sm:$0xff] }
  0x21   :  { %221 = vmatpush.msra.mxu3 %v95_v13  ;;  %149 = vmatpush.msra.mxu1 %v95_v13 }
  0x22   :  { %206 = vmatpush.msra.mxu2 %v112_v14  ;;  %127 = vmatpush.msra.mxu0 %v112_v14 }
  0x23   :  { %222 = vmatpush.msra.mxu3 %v94_v15  ;;  %150 = vmatpush.msra.mxu1 %v94_v15 }
  0x24   :  { %207 = vmatpush.msra.mxu2 %v111_v16  ;;  %128 = vmatpush.msra.mxu0 %v111_v16 }
  0x25   :  { %223 = vmatpush.msra.mxu3 %v93_v17  ;;  %151 = vmatpush.msra.mxu1 %v93_v17 }
  0x26   :  { %208 = vmatpush.msra.mxu2 %v110_v18  ;;  %129 = vmatpush.msra.mxu0 %v110_v18 }
  0x27   :  { %224 = vmatpush.msra.mxu3 %v92_v19  ;;  %152 = vmatpush.msra.mxu1 %v92_v19 }
  0x28   :  { %209 = vmatpush.msra.mxu2 %v109_v20  ;;  %130 = vmatpush.msra.mxu0 %v109_v20 }
  0x29   :  { %225 = vmatpush.msra.mxu3 %v91_v21  ;;  %153 = vmatpush.msra.mxu1 %v91_v21 }
  0x2a   :  { %210 = vmatpush.msra.mxu2 %v108_v22  ;;  %131 = vmatpush.msra.mxu0 %v108_v22 }
  0x2b   :  { %226 = vmatpush.msra.mxu3 %v90_v23  ;;  %154 = vmatpush.msra.mxu1 %v90_v23 }
  0x2c   :  { %211 = vmatpush.msra.mxu2 %v107_v24  ;;  %132 = vmatpush.msra.mxu0 %v107_v24 }
  0x2d   :  { %227 = vmatpush.msra.mxu3 %v89_v25  ;;  %155 = vmatpush.msra.mxu1 %v89_v25 }
  0x2e   :  { %212 = vmatpush.msra.mxu2 %v106_v26  ;;  %133 = vmatpush.msra.mxu0 %v106_v26 }
  0x2f   :  { %228 = vmatpush.msra.mxu3 %v88_v27  ;;  %156 = vmatpush.msra.mxu1 %v88_v27 }
  0x30   :  { %213 = vmatpush.msra.mxu2 %v105_v28  ;;  %134 = vmatpush.msra.mxu0 %v105_v28 }
  0x31   :  { %229 = vmatpush.msra.mxu3 %v87_v29  ;;  %157 = vmatpush.msra.mxu1 %v87_v29 }
  0x32   :  { %214 = vmatpush.msra.mxu2 %v104_v30  ;;  %135 = vmatpush.msra.mxu0 %v104_v30 }
  0x33   :  { %230 = vmatpush.msra.mxu3 %v86_v31  ;;  %139 = vmatmul.f32.vlgmr.msra.gmra.mxu2 %v103_v32 }
  0x34   :  { %162 = vmatmul.f32.vlgmr.msra.gmra.mxu3 %v85_v33  ;;  %158 = vmatpush.msra.mxu1 %v86_v31 }
  0x35   :  { %136 = vmatmul.f32.vlgmr.msra.gmra.mxu0 %v102_v34  ;;  %159 = vmatmul.f32.vlgmr.msra.gmra.mxu1 %v84_v35 }
  0xb2   :  { %v137_v37 = vpop.f32.mrf.mxu0  ;;  %v160_v38 = vpop.f32.mrf.mxu1 }
  0xb3   :  { %v161_v39 = vadd.f32 %v160_v38, %v137_v37 }
  0xb5   :  { %v170_v40 = vadd.f32 %v238_v36, %v161_v39 }
  0xb6   :  { %v140_v41 = vpop.f32.mrf.mxu2 }
  0xb7   :  { %v163_v42 = vpop.f32.mrf.mxu3  ;;  %239 = vtanh.f32 %v170_v40 }
  0xb8   :  { %v164_v43 = vadd.f32 %v163_v42, %v140_v41 }
  0xba   :  { %v171_v44 = vadd.f32 %v238_v36, %v164_v43 }
  0xbc   :  { %241 = vtanh.f32 %v171_v44 }
  0xbd   :  { %v240_v45 = vpop.eup %239 }
  0xbe   :  { %v174_v46 = vadd.f32 %v240_v45, %v84_v35 }
  0xc0   :  { %176 = vst [vmem:[#allocation10] sm:$0xff] %v174_v46 }
  0xc2   :  { %v242_v47 = vpop.eup %241 }
  0xc3   :  { %v175_v48 = vadd.f32 %v242_v47, %v85_v33 }
  0xc5   :  { %177 = vst [vmem:[#allocation10 + $0x8] sm:$0xff] %v175_v48 }
  0xc6   :  { %190 = dma.vmem_to_hbm [thread:$0]  %s183_s14, 256, %s185_s17, [#allocation4], %s372_s26, %s372_s26, %s373_s27  }
  0xc7   :  { %369 = dma.done.wait [#allocation4], 256  }
  0xc8   :  { %370 = vsyncadd [#allocation4], 4294967040 }
  0xc9   :  { %195 = vsyncpa [#allocation3], 1 }
  0xca   :  { %196 = vsyncpa [#allocation6], 1 }
  0xcb   :  { %197 = vsyncpa [#allocation9], 1 }
  0xcc   :  { %198 = vsyncpa [#allocation4], 1 }

// kernel: tpu_custom_call.1
= control target key start
LH: loop header
LB: loop body
LE: loop exit
PB: predicated region body
PF: predicated region fallthrough
CT: control target
= control target key end

     0   :  { %10 = vsyncpa [#allocation3], 0  ;;  %s441_s0 = inlined_call_operand.hbm [shape: f32[16,128], index: 0, kind: input, shape index: {}]   ;;  %s442_s1 = inlined_call_operand.hbm [shape: f32[16,128], index: 1, kind: input, shape index: {}]   ;;  %s443_s2 = inlined_call_operand.hbm [shape: f32[128,128], index: 2, kind: input, shape index: {}]   ;;  %s444_s3 = inlined_call_operand.hbm [shape: f32[128,128], index: 3, kind: input, shape index: {}]   ;;  %s445_s4 = inlined_call_operand.vmem [shape: f32[1,128], index: 4, kind: input, shape index: {}]   ;;  %s446_s5 = inlined_call_operand.hbm [shape: f32[16,128], index: 5, kind: output, shape index: {}]  }
   0x1   :  { %11 = vsyncpa [#allocation6], 0 }
   0x2   :  { %12 = vsyncpa [#allocation9], 0 }
   0x3   :  { %13 = vsyncpa [#allocation4], 0  ;;  %s31_s20 = sshll.u32 %s442_s1, 4  ;;  %s371_s21 = smov [#allocation5]   ;;  %s32_s20 = int_to_ptr.hbm [resolvable:$true] %s31_s20 }
   0x4   :  { %s33_s22 = sshll.u32 %s371_s21, 4  ;;  %s18_s25 = sshll.u32 %s441_s0, 4  ;;  %s34_s22 = int_to_ptr.vmem [resolvable:$true] %s33_s22  ;;  %s19_s25 = int_to_ptr.hbm [resolvable:$true] %s18_s25 }
   0x5   :  { %s372_s26 = smov 128   ;;  %s373_s27 = smov 8  }
   0x6   :  { %39 = dma.hbm_to_vmem [thread:$0]  %s32_s20, 256, %s34_s22, [#allocation6], %s372_s26, %s372_s26, %s373_s27  }
   0x7   :  { %s374_s28 = smov [#allocation2]   ;;  %s44_s1 = sshll.u32 %s443_s2, 4  ;;  %s45_s1 = int_to_ptr.hbm [resolvable:$true] %s44_s1 }
   0x8   :  { %s20_s29 = sshll.u32 %s374_s28, 4  ;;  %s57_s8 = sshll.u32 %s444_s3, 4  ;;  %s21_s29 = int_to_ptr.vmem [resolvable:$true] %s20_s29  ;;  %s58_s8 = int_to_ptr.hbm [resolvable:$true] %s57_s8 }
   0x9   :  { %26 = dma.hbm_to_vmem [thread:$0]  %s19_s25, 256, %s21_s29, [#allocation3], %s372_s26, %s372_s26, %s373_s27  }
   0xa   :  { %s375_s9 = smov [#allocation7]   ;;  %s376_s11 = smov [#allocation8]  }
   0xb   :  { %s46_s10 = sshll.u32 %s375_s9, 4  ;;  %s59_s2 = sshll.u32 %s376_s11, 4  ;;  %s47_s10 = int_to_ptr.vmem [resolvable:$true] %s46_s10  ;;  %s60_s2 = int_to_ptr.vmem [resolvable:$true] %s59_s2 }
   0xc   :  { %52 = dma.hbm_to_vmem [thread:$0]  %s45_s1, 2048, %s47_s10, [#allocation6], %s372_s26, %s372_s26, %s373_s27  }
   0xd   :  { %65 = dma.hbm_to_vmem [thread:$0]  %s58_s8, 2048, %s60_s2, [#allocation9], %s372_s26, %s372_s26, %s373_s27  }
   0xe   :  { %363 = dma.done.wait [#allocation3], 256  }
   0xf   :  { %364 = vsyncadd [#allocation3], 4294967040 }
  0x10   :  { %365 = dma.done.wait [#allocation6], 2304  }
  0x11   :  { %366 = vsyncadd [#allocation6], 4294964992 }
  0x12   :  { %367 = dma.done.wait [#allocation9], 2048  }
  0x13   :  { %368 = vsyncadd [#allocation9], 4294965248  ;;  %v119_v0 = vld [vmem:[#allocation8 + $0x78] sm:$0xff]  ;;  %v118_v2 = vld [vmem:[#allocation8 + $0x70] sm:$0xff]  ;;  %s377_s13 = smov [#allocation10]   ;;  %s184_s17 = sshll.u32 %s446_s5, 4  ;;  %s185_s17 = int_to_ptr.hbm [resolvable:$true] %s184_s17 }
  0x14   :  { %v101_v1 = vld [vmem:[#allocation7 + $0x78] sm:$0xff]  ;;  %199 = vmatpush.msra.mxu2 %v119_v0  ;;  %v100_v3 = vld [vmem:[#allocation7 + $0x70] sm:$0xff]  ;;  %v117_v4 = vld [vmem:[#allocation8 + $0x68] sm:$0xff]  ;;  %120 = vmatpush.msra.mxu0 %v119_v0  ;;  %s182_s14 = sshll.u32 %s377_s13, 4  ;;  %s183_s14 = int_to_ptr.vmem [resolvable:$true] %s182_s14 }
  0x15   :  { %215 = vmatpush.msra.mxu3 %v101_v1  ;;  %v99_v5 = vld [vmem:[#allocation7 + $0x68] sm:$0xff]  ;;  %143 = vmatpush.msra.mxu1 %v101_v1  ;;  %v116_v6 = vld [vmem:[#allocation8 + $0x60] sm:$0xff]  ;;  %v115_v8 = vld [vmem:[#allocation8 + $0x58] sm:$0xff] }
  0x16   :  { %200 = vmatpush.msra.mxu2 %v118_v2  ;;  %v98_v7 = vld [vmem:[#allocation7 + $0x60] sm:$0xff]  ;;  %121 = vmatpush.msra.mxu0 %v118_v2  ;;  %v97_v9 = vld [vmem:[#allocation7 + $0x58] sm:$0xff]  ;;  %v114_v10 = vld [vmem:[#allocation8 + $0x50] sm:$0xff] }
  0x17   :  { %216 = vmatpush.msra.mxu3 %v100_v3  ;;  %144 = vmatpush.msra.mxu1 %v100_v3  ;;  %v96_v11 = vld [vmem:[#allocation7 + $0x50] sm:$0xff]  ;;  %v113_v12 = vld [vmem:[#allocation8 + $0x48] sm:$0xff]  ;;  %v112_v14 = vld [vmem:[#allocation8 + $0x40] sm:$0xff] }
  0x18   :  { %201 = vmatpush.msra.mxu2 %v117_v4  ;;  %122 = vmatpush.msra.mxu0 %v117_v4  ;;  %v95_v13 = vld [vmem:[#allocation7 + $0x48] sm:$0xff]  ;;  %v94_v15 = vld [vmem:[#allocation7 + $0x40] sm:$0xff]  ;;  %v111_v16 = vld [vmem:[#allocation8 + $0x38] sm:$0xff] }
  0x19   :  { %217 = vmatpush.msra.mxu3 %v99_v5  ;;  %145 = vmatpush.msra.mxu1 %v99_v5  ;;  %v93_v17 = vld [vmem:[#allocation7 + $0x38] sm:$0xff]  ;;  %v110_v18 = vld [vmem:[#allocation8 + $0x30] sm:$0xff]  ;;  %v109_v20 = vld [vmem:[#allocation8 + $0x28] sm:$0xff] }
  0x1a   :  { %202 = vmatpush.msra.mxu2 %v116_v6  ;;  %123 = vmatpush.msra.mxu0 %v116_v6  ;;  %v92_v19 = vld [vmem:[#allocation7 + $0x30] sm:$0xff]  ;;  %v91_v21 = vld [vmem:[#allocation7 + $0x28] sm:$0xff]  ;;  %v108_v22 = vld [vmem:[#allocation8 + $0x20] sm:$0xff] }
  0x1b   :  { %218 = vmatpush.msra.mxu3 %v98_v7  ;;  %146 = vmatpush.msra.mxu1 %v98_v7  ;;  %v90_v23 = vld [vmem:[#allocation7 + $0x20] sm:$0xff]  ;;  %v107_v24 = vld [vmem:[#allocation8 + $0x18] sm:$0xff]  ;;  %v106_v26 = vld [vmem:[#allocation8 + $0x10] sm:$0xff] }
  0x1c   :  { %203 = vmatpush.msra.mxu2 %v115_v8  ;;  %124 = vmatpush.msra.mxu0 %v115_v8  ;;  %v89_v25 = vld [vmem:[#allocation7 + $0x18] sm:$0xff]  ;;  %v88_v27 = vld [vmem:[#allocation7 + $0x10] sm:$0xff]  ;;  %v105_v28 = vld [vmem:[#allocation8 + $0x8] sm:$0xff] }
  0x1d   :  { %219 = vmatpush.msra.mxu3 %v97_v9  ;;  %147 = vmatpush.msra.mxu1 %v97_v9  ;;  %v87_v29 = vld [vmem:[#allocation7 + $0x8] sm:$0xff]  ;;  %v104_v30 = vld [vmem:[#allocation8] sm:$0xff]  ;;  %v103_v32 = vld [vmem:[#allocation5 + $0x8] sm:$0xff] }
  0x1e   :  { %204 = vmatpush.msra.mxu2 %v114_v10  ;;  %125 = vmatpush.msra.mxu0 %v114_v10  ;;  %v86_v31 = vld [vmem:[#allocation7] sm:$0xff]  ;;  %v85_v33 = vld [vmem:[#allocation2 + $0x8] sm:$0xff]  ;;  %v102_v34 = vld [vmem:[#allocation5] sm:$0xff] }
  0x1f   :  { %220 = vmatpush.msra.mxu3 %v96_v11  ;;  %148 = vmatpush.msra.mxu1 %v96_v11  ;;  %v84_v35 = vld [vmem:[#allocation2] sm:$0xff] }
  0x20   :  { %205 = vmatpush.msra.mxu2 %v113_v12  ;;  %126 = vmatpush.msra.mxu0 %v113_v12  ;;  %v238_v36 = vld [vmem:[%s445_s4] ss:$0 sm:$0xff] }
  0x21   :  { %221 = vmatpush.msra.mxu3 %v95_v13  ;;  %149 = vmatpush.msra.mxu1 %v95_v13 }
  0x22   :  { %206 = vmatpush.msra.mxu2 %v112_v14  ;;  %127 = vmatpush.msra.mxu0 %v112_v14 }
  0x23   :  { %222 = vmatpush.msra.mxu3 %v94_v15  ;;  %150 = vmatpush.msra.mxu1 %v94_v15 }
  0x24   :  { %207 = vmatpush.msra.mxu2 %v111_v16  ;;  %128 = vmatpush.msra.mxu0 %v111_v16 }
  0x25   :  { %223 = vmatpush.msra.mxu3 %v93_v17  ;;  %151 = vmatpush.msra.mxu1 %v93_v17 }
  0x26   :  { %208 = vmatpush.msra.mxu2 %v110_v18  ;;  %129 = vmatpush.msra.mxu0 %v110_v18 }
  0x27   :  { %224 = vmatpush.msra.mxu3 %v92_v19  ;;  %152 = vmatpush.msra.mxu1 %v92_v19 }
  0x28   :  { %209 = vmatpush.msra.mxu2 %v109_v20  ;;  %130 = vmatpush.msra.mxu0 %v109_v20 }
  0x29   :  { %225 = vmatpush.msra.mxu3 %v91_v21  ;;  %153 = vmatpush.msra.mxu1 %v91_v21 }
  0x2a   :  { %210 = vmatpush.msra.mxu2 %v108_v22  ;;  %131 = vmatpush.msra.mxu0 %v108_v22 }
  0x2b   :  { %226 = vmatpush.msra.mxu3 %v90_v23  ;;  %154 = vmatpush.msra.mxu1 %v90_v23 }
  0x2c   :  { %211 = vmatpush.msra.mxu2 %v107_v24  ;;  %132 = vmatpush.msra.mxu0 %v107_v24 }
  0x2d   :  { %227 = vmatpush.msra.mxu3 %v89_v25  ;;  %155 = vmatpush.msra.mxu1 %v89_v25 }
  0x2e   :  { %212 = vmatpush.msra.mxu2 %v106_v26  ;;  %133 = vmatpush.msra.mxu0 %v106_v26 }
  0x2f   :  { %228 = vmatpush.msra.mxu3 %v88_v27  ;;  %156 = vmatpush.msra.mxu1 %v88_v27 }
  0x30   :  { %213 = vmatpush.msra.mxu2 %v105_v28  ;;  %134 = vmatpush.msra.mxu0 %v105_v28 }
  0x31   :  { %229 = vmatpush.msra.mxu3 %v87_v29  ;;  %157 = vmatpush.msra.mxu1 %v87_v29 }
  0x32   :  { %214 = vmatpush.msra.mxu2 %v104_v30  ;;  %135 = vmatpush.msra.mxu0 %v104_v30 }
  0x33   :  { %230 = vmatpush.msra.mxu3 %v86_v31  ;;  %139 = vmatmul.f32.vlgmr.msra.gmra.mxu2 %v103_v32 }
  0x34   :  { %162 = vmatmul.f32.vlgmr.msra.gmra.mxu3 %v85_v33  ;;  %158 = vmatpush.msra.mxu1 %v86_v31 }
  0x35   :  { %136 = vmatmul.f32.vlgmr.msra.gmra.mxu0 %v102_v34  ;;  %159 = vmatmul.f32.vlgmr.msra.gmra.mxu1 %v84_v35 }
  0xb2   :  { %v137_v37 = vpop.f32.mrf.mxu0  ;;  %v160_v38 = vpop.f32.mrf.mxu1 }
  0xb3   :  { %v161_v39 = vadd.f32 %v160_v38, %v137_v37 }
  0xb5   :  { %v170_v40 = vadd.f32 %v238_v36, %v161_v39 }
  0xb6   :  { %v140_v41 = vpop.f32.mrf.mxu2 }
  0xb7   :  { %v163_v42 = vpop.f32.mrf.mxu3  ;;  %239 = vtanh.f32 %v170_v40 }
  0xb8   :  { %v164_v43 = vadd.f32 %v163_v42, %v140_v41 }
  0xba   :  { %v171_v44 = vadd.f32 %v238_v36, %v164_v43 }
  0xbc   :  { %241 = vtanh.f32 %v171_v44 }
  0xbd   :  { %v240_v45 = vpop.eup %239 }
  0xbe   :  { %v174_v46 = vadd.f32 %v240_v45, %v84_v35 }
  0xc0   :  { %176 = vst [vmem:[#allocation10] sm:$0xff] %v174_v46 }
  0xc2   :  { %v242_v47 = vpop.eup %241 }
  0xc3   :  { %v175_v48 = vadd.f32 %v242_v47, %v85_v33 }
  0xc5   :  { %177 = vst [vmem:[#allocation10 + $0x8] sm:$0xff] %v175_v48 }
  0xc6   :  { %190 = dma.vmem_to_hbm [thread:$0]  %s183_s14, 256, %s185_s17, [#allocation4], %s372_s26, %s372_s26, %s373_s27  }
  0xc7   :  { %369 = dma.done.wait [#allocation4], 256  }
  0xc8   :  { %370 = vsyncadd [#allocation4], 4294967040 }
  0xc9   :  { %195 = vsyncpa [#allocation3], 1 }
  0xca   :  { %196 = vsyncpa [#allocation6], 1 }
  0xcb   :  { %197 = vsyncpa [#allocation9], 1 }
  0xcc   :  { %198 = vsyncpa [#allocation4], 1 }

</bundles_post_ra>
